<compile_context>
chip_gen: v5e
topology: v5e:2x2
jax: 0.10.0
libtpu: 0.0.40
codegen_flags: <defaults>
</compile_context>

<pallas_src>
import jax
import jax.numpy as jnp
from jax.experimental import pallas as pl
from jax.experimental.pallas import tpu as pltpu


def _feature_lte_kernel(field_ref, feat_ref, out_ref):
    # field_ref: (N, D); feat_ref / out_ref: (TB, N, D) -- TB batch slabs per step.
    feat = feat_ref[...]
    # LTE forward == hard step; tanh dropped (monotonic, tanh(0) == 0).
    step = (field_ref[...] > 0).astype(feat.dtype)
    # (TB, N, D) * (N, D) broadcasts; stays in feature dtype throughout.
    out_ref[...] = feat * step


def feature_lte_forward(
    feature,
    field,
    *,
    target_block_bytes=4 * 1024 * 1024,   # ~4 MiB feature block: safe on v5e/v6e/v7x
    vmem_limit_bytes=32 * 1024 * 1024,
):
    """feature: [B, N, D], field: [N, D] -> [B, N, D]"""
    B, N, D = feature.shape
    assert field.shape == (N, D), (field.shape, (N, D))

    itemsize = jnp.dtype(feature.dtype).itemsize
    slab_bytes = N * D * itemsize

    # Batch as many slabs per grid step as fit the target block size.
    tb = max(1, min(B, target_block_bytes // max(1, slab_bytes)))
    # Keep TB a divisor of B so every block is full (unmasked, lane-dense stores).
    while B % tb != 0:
        tb -= 1
    grid = (B // tb,)

    grid_spec = pltpu.PrefetchScalarGridSpec(
        num_scalar_prefetch=0,
        grid=grid,
        in_specs=[
            # field: constant index_map -> tile stays resident, no re-DMA per step.
            pl.BlockSpec((N, D), lambda b: (0, 0)),
            # feature: TB batch slabs per step.
            pl.BlockSpec((tb, N, D), lambda b: (b, 0, 0)),
        ],
        out_specs=pl.BlockSpec((tb, N, D), lambda b: (b, 0, 0)),
    )

    cost = pl.CostEstimate(
        flops=B * N * D,
        transcendentals=0,
        bytes_accessed=2 * B * N * D * itemsize
        + N * D * jnp.dtype(field.dtype).itemsize,
    )

    return pl.pallas_call(
        _feature_lte_kernel,
        out_shape=jax.ShapeDtypeStruct((B, N, D), feature.dtype),
        grid_spec=grid_spec,
        compiler_params=pltpu.CompilerParams(
            dimension_semantics=("parallel",),   # batch axis shards across TCs (v7x)
            vmem_limit_bytes=vmem_limit_bytes,
        ),
        cost_estimate=cost,
    )(field, feature)


if __name__ == "__main__":
    # Small shapes consistent with the module: batch=2, featureNumb=8, featureDim=128.
    # (At this size a fused XLA elementwise op would beat any pallas_call; the
    # kernel pays off when B*N*D is multi-MB. We still run it for correctness.)
    B, feature_numb, feature_dim = 2, 8, 128
    init_mean = 4.0

    key = jax.random.PRNGKey(0)
    k_field, k_feat = jax.random.split(key)

    # nn.init.normal(self.field, mean=init, std=0.01) -- deterministic synthetic init
    field = init_mean + 0.01 * jax.random.normal(
        k_field, (feature_numb, feature_dim), dtype=jnp.float32
    )
    feature = jax.random.normal(
        k_feat, (B, feature_numb, feature_dim), dtype=jnp.float32
    )

    out = feature_lte_forward(feature, field)
    jax.block_until_ready(out)

    # Reference check (pure JAX, mirrors the module including the tanh).
    step_ref = (jnp.tanh(field) > 0.0).astype(feature.dtype)
    ref = feature * step_ref[None, :, :]
    assert out.shape == ref.shape
    assert jnp.allclose(out, ref, atol=1e-6), "mismatch vs reference"

    print("KERNEL_OK")
</pallas_src>

<mosaic_0001>
module attributes {stable_mosaic.version = 11 : i64} {
  func.func @_feature_lte_kernel(%arg0: i32, %arg1: memref<8x128xf32, #tpu.memory_space<vmem>>, %arg2: memref<2x8x128xf32, #tpu.memory_space<vmem>>, %arg3: memref<2x8x128xf32, #tpu.memory_space<vmem>>) attributes {dimension_semantics = [#tpu.dimension_semantics<parallel>], iteration_bounds = array<i64: 1>, scalar_prefetch = 0 : i64, scratch_operands = 0 : i64, tpu.core_type = #tpu.core_type<tc>, window_params = [{pipeline_mode = #tpu.pipeline_mode<synchronous>, transform_indices = @transform_0, window_bounds = array<i64: 8, 128>}, {transform_indices = @transform_1, window_bounds = array<i64: 2, 8, 128>}, {transform_indices = @transform_2, window_bounds = array<i64: 2, 8, 128>}]} {
    %c0 = arith.constant 0 : index
    %c0_0 = arith.constant 0 : index
    %c0_1 = arith.constant 0 : index
    %0 = vector.load %arg2[%c0, %c0_0, %c0_1] : memref<2x8x128xf32, #tpu.memory_space<vmem>>, vector<2x8x128xf32>
    %c0_2 = arith.constant 0 : index
    %c0_3 = arith.constant 0 : index
    %1 = vector.load %arg1[%c0_2, %c0_3] : memref<8x128xf32, #tpu.memory_space<vmem>>, vector<8x128xf32>
    %cst = arith.constant 0.000000e+00 : f32
    %2 = vector.broadcast %cst : f32 to vector<8x128xf32>
    %3 = arith.cmpf ogt, %1, %2 : vector<8x128xf32>
    %4 = arith.extui %3 : vector<8x128xi1> to vector<8x128xi32>
    %5 = arith.sitofp %4 : vector<8x128xi32> to vector<8x128xf32>
    %6 = vector.shape_cast %5 : vector<8x128xf32> to vector<1x8x128xf32>
    %7 = vector.broadcast %6 : vector<1x8x128xf32> to vector<2x8x128xf32>
    %8 = arith.mulf %0, %7 : vector<2x8x128xf32>
    %c0_4 = arith.constant 0 : index
    %c0_5 = arith.constant 0 : index
    %c0_6 = arith.constant 0 : index
    %9 = vector.load %arg3[%c0_4, %c0_5, %c0_6] : memref<2x8x128xf32, #tpu.memory_space<vmem>>, vector<2x8x128xf32>
    tpu.vector_store %arg3[%c0_4, %c0_5, %c0_6], %8 {strides = array<i32>} : memref<2x8x128xf32, #tpu.memory_space<vmem>>, vector<2x8x128xf32>,
    return
  }
  func.func @transform_0(%arg0: i32) -> (i32, i32) {
    %c0_i32 = arith.constant 0 : i32
    %c0_i32_0 = arith.constant 0 : i32
    %c0_i32_1 = arith.constant 0 : i32
    return %c0_i32, %c0_i32_0 : i32, i32
  }
  func.func @transform_1(%arg0: i32) -> (i32, i32, i32) {
    %c0_i32 = arith.constant 0 : i32
    %c0_i32_0 = arith.constant 0 : i32
    %c0_i32_1 = arith.constant 0 : i32
    return %arg0, %c0_i32, %c0_i32_0 : i32, i32, i32
  }
  func.func @transform_2(%arg0: i32) -> (i32, i32, i32) {
    %c0_i32 = arith.constant 0 : i32
    %c0_i32_0 = arith.constant 0 : i32
    %c0_i32_1 = arith.constant 0 : i32
    return %arg0, %c0_i32, %c0_i32_0 : i32, i32, i32
  }
}

</mosaic_0001>

<bundles_post_ra>
// kernel: tpu_custom_call.1
= control target key start
LH: loop header
LB: loop body
LE: loop exit
PB: predicated region body
PF: predicated region fallthrough
CT: control target
= control target key end

     0   :  { %7 = vsyncpa [#allocation3], 0  ;;  %s187_s0 = inlined_call_operand.hbm [shape: f32[8,128], index: 0, kind: input, shape index: {}]   ;;  %s188_s1 = inlined_call_operand.hbm [shape: f32[2,8,128], index: 1, kind: input, shape index: {}]   ;;  %s189_s2 = inlined_call_operand.hbm [shape: f32[2,8,128], index: 2, kind: output, shape index: {}]  }
   0x1   :  { %8 = vsyncpa [#allocation6], 0 }
   0x2   :  { %9 = vsyncpa [#allocation4], 0  ;;  %s15_s11 = sshll.u32 %s187_s0, 4  ;;  %s157_s12 = smov [#allocation2]   ;;  %s16_s11 = int_to_ptr.hbm [resolvable:$true] %s15_s11 }
   0x3   :  { %s17_s13 = sshll.u32 %s157_s12, 4  ;;  %s25_s16 = sshll.u32 %s188_s1, 4  ;;  %s18_s13 = int_to_ptr.vmem [resolvable:$true] %s17_s13  ;;  %s26_s16 = int_to_ptr.hbm [resolvable:$true] %s25_s16 }
   0x4   :  { %20 = dma.hbm_to_vmem [thread:$0]  %s16_s11, 128, %s18_s13, [#allocation3]  }
   0x5   :  { %s158_s17 = smov [#allocation5]   ;;  %s159_s19 = smov 128  }
   0x6   :  { %s27_s18 = sshll.u32 %s158_s17, 4  ;;  %s160_s20 = smov 8   ;;  %s28_s18 = int_to_ptr.vmem [resolvable:$true] %s27_s18 }
   0x7   :  { %33 = dma.hbm_to_vmem [thread:$0]  %s26_s16, 256, %s28_s18, [#allocation6], %s159_s19, %s159_s19, %s160_s20  }
   0x8   :  { %151 = dma.done.wait [#allocation3], 128  }
   0x9   :  { %152 = vsyncadd [#allocation3], 4294967168 }
   0xa   :  { %153 = dma.done.wait [#allocation6], 256  }
   0xb   :  { %154 = vsyncadd [#allocation6], 4294967040  ;;  %v42_v0 = vld [vmem:[#allocation5] sm:$0xff]  ;;  %v44_v1 = vld [vmem:[#allocation2] sm:$0xff]  ;;  %s161_s0 = smov [#allocation7]   ;;  %s58_s23 = sshll.u32 %s189_s2, 4  ;;  %s59_s23 = int_to_ptr.hbm [resolvable:$true] %s58_s23 }
   0xc   :  { %v43_v2 = vld [vmem:[#allocation5 + $0x8] sm:$0xff]  ;;  %vm45_vm0 = vcmp.gt.f32.partialorder %v44_v1, 0.0  ;;  %s56_s21 = sshll.u32 %s161_s0, 4  ;;  %v162_v3 = vmov 0.0   ;;  %s57_s21 = int_to_ptr.vmem [resolvable:$true] %s56_s21 }
   0xd   :  { %v72_v4 = vsel %vm45_vm0, 1.0, %v162_v3 }
   0xe   :  { %v48_v5 = vmul.f32 %v72_v4, %v42_v0  ;;  %v49_v6 = vmul.f32 %v72_v4, %v43_v2 }
  0x10   :  { %50 = vst [vmem:[#allocation7] sm:$0xff] %v48_v5 }
  0x11   :  { %51 = vst [vmem:[#allocation7 + $0x8] sm:$0xff] %v49_v6 }
  0x12   :  { %64 = dma.vmem_to_hbm [thread:$0]  %s57_s21, 256, %s59_s23, [#allocation4], %s159_s19, %s159_s19, %s160_s20  }
  0x13   :  { %155 = dma.done.wait [#allocation4], 256  }
  0x14   :  { %156 = vsyncadd [#allocation4], 4294967040 }
  0x15   :  { %69 = vsyncpa [#allocation3], 1 }
  0x16   :  { %70 = vsyncpa [#allocation6], 1 }
  0x17   :  { %71 = vsyncpa [#allocation4], 1 }

</bundles_post_ra>
